<compile_context>
chip_gen: v5e
topology: v5e:2x2
jax: 0.10.0
libtpu: 0.0.40
codegen_flags: <defaults>
</compile_context>

<pallas_src>
import functools

import jax
import jax.numpy as jnp
from jax.experimental import pallas as pl
from jax.experimental.pallas import tpu as pltpu


def _attn_core_kernel(q_ref, kT_ref, v_ref, attn_ref, ctx_ref, *, n_real, n_pad):
    """One grid step = (batch b, head h, q-row tile qi)."""
    q = q_ref[0, 0]          # [tq, dk]     (softmax scale already applied)
    kT = kT_ref[0, 0]        # [dk, n_pad]  this head's K^T (no in-kernel transpose)
    v = v_ref[0, 0]          # [n_pad, dv]

    # logits = q @ K^T -> [tq, n_pad], accumulated in f32 on the MXU.
    logits = jnp.dot(q, kT, preferred_element_type=jnp.float32)

    if n_pad != n_real:
        # Mask zero-padded key columns so they get zero softmax weight.
        key_idx = jax.lax.broadcasted_iota(jnp.int32, logits.shape, 1)
        logits = jnp.where(key_idx < n_real, logits, jnp.float32(-1e30))

    # Numerically-stable softmax over the key axis.
    m = jnp.max(logits, axis=-1, keepdims=True)
    e = jnp.exp(logits - m)
    s = jnp.sum(e, axis=-1, keepdims=True)
    p = e * pl.reciprocal(s)                 # exact reciprocal (keeps f32 accuracy)

    # TODO(synk): the PyTorch forward's masked_fill is non-in-place and its
    # result is discarded (mask has no effect) and attn_dropout(p=0.0) is the
    # identity, so both are intentionally omitted.
    attn_ref[0, 0] = p.astype(attn_ref.dtype)          # lane-dense (tq, n_pad) store

    ctx = jnp.dot(p.astype(v.dtype), v, preferred_element_type=jnp.float32)
    ctx_ref[0, 0] = ctx                                 # f32 [tq, dv]


def _vmem_budget_bytes():
    """~85% of this chip's physical VMEM (128 MiB v5e/v6e, 64 MiB v7x)."""
    try:
        cap = pltpu.get_tpu_info().vmem_capacity_bytes
    except Exception:  # older jax / info unavailable -> conservative fallback
        cap = 64 * 1024 * 1024
    return int(0.85 * cap)


def _vmem_estimate_bytes(tq, n_pad, dk, dv):
    """Double-buffered pipeline blocks + in-kernel f32 temporaries."""
    blocks = (tq * dk            # q tile
              + dk * n_pad       # K^T (resident per (batch, head))
              + n_pad * dv       # V   (resident per (batch, head))
              + tq * n_pad       # attn output tile
              + tq * dv) * 4     # ctx output tile
    temps = 3 * tq * n_pad * 4   # logits / exp / softmax f32 temporaries
    return 2 * blocks + temps


def _pick_q_tile(n_pad, dk, dv, budget):
    # n_pad is a multiple of 128, so 128 always divides it; prefer the largest
    # tile that fits the per-chip VMEM budget.
    for t in (1024, 512, 256, 128):
        if t <= n_pad and n_pad % t == 0 and _vmem_estimate_bytes(t, n_pad, dk, dv) <= budget:
            return t
    # TODO(synk): very long sequences on v7x (64 MiB VMEM) would need a
    # key-tiled two-pass softmax; 128-row q tiles are the fallback here.
    return 128


def attention_forward(x, wq, wk, wv, wo, bo, *, heads, dim_key, dim_value):
    b, n, dim = x.shape
    scale = dim_key ** (-0.5)

    # Pad the sequence to a multiple of 128 so the attn stores are lane-dense.
    n_pad = ((n + 127) // 128) * 128
    x_pad = jnp.pad(x, ((0, 0), (0, n_pad - n), (0, 0))) if n_pad != n else x

    # Full-width projection GEMMs (XLA), computed exactly once (per review).
    q = (x_pad @ wq).reshape(b, n_pad, heads, dim_key).transpose(0, 2, 1, 3) * scale
    kT = (x_pad @ wk).reshape(b, n_pad, heads, dim_key).transpose(0, 2, 3, 1)   # [b,h,dk,n]
    v = (x_pad @ wv).reshape(b, n_pad, heads, dim_value).transpose(0, 2, 1, 3)  # [b,h,n,dv]

    budget = _vmem_budget_bytes()
    tq = _pick_q_tile(n_pad, dim_key, dim_value, budget)
    n_q = n_pad // tq

    est = _vmem_estimate_bytes(tq, n_pad, dim_key, dim_value)
    vmem_limit = int(min(budget, max(32 * 1024 * 1024, 2 * est)))

    kernel = functools.partial(_attn_core_kernel, n_real=n, n_pad=n_pad)

    grid_spec = pltpu.PrefetchScalarGridSpec(
        num_scalar_prefetch=0,
        grid=(b, heads, n_q),
        in_specs=[
            pl.BlockSpec((1, 1, tq, dim_key), lambda bi, hi, qi: (bi, hi, qi, 0)),      # q tile
            pl.BlockSpec((1, 1, dim_key, n_pad), lambda bi, hi, qi: (bi, hi, 0, 0)),    # K^T (head)
            pl.BlockSpec((1, 1, n_pad, dim_value), lambda bi, hi, qi: (bi, hi, 0, 0)),  # V (head)
        ],
        out_specs=[
            pl.BlockSpec((1, 1, tq, n_pad), lambda bi, hi, qi: (bi, hi, qi, 0)),        # attn
            pl.BlockSpec((1, 1, tq, dim_value), lambda bi, hi, qi: (bi, hi, qi, 0)),    # ctx
        ],
    )

    attn_full, ctx_full = pl.pallas_call(
        kernel,
        out_shape=(
            jax.ShapeDtypeStruct((b, heads, n_pad, n_pad), x.dtype),           # attention map
            jax.ShapeDtypeStruct((b, heads, n_pad, dim_value), jnp.float32),   # per-head context
        ),
        grid_spec=grid_spec,
        compiler_params=pltpu.CompilerParams(
            dimension_semantics=("parallel", "parallel", "parallel"),
            vmem_limit_bytes=vmem_limit),
    )(q, kT, v)

    # Slice off the sequence padding and apply the output projection as one
    # full-width [b*n, heads*dv] x [heads*dv, dim] GEMM (XLA).
    attn = attn_full[:, :, :n, :n]
    ctx = ctx_full[:, :, :n, :].transpose(0, 2, 1, 3).reshape(b, n, heads * dim_value)
    y = (ctx @ wo.astype(jnp.float32) + bo.astype(jnp.float32)).astype(x.dtype)
    return y, attn


def xavier_uniform(key, shape, dtype=jnp.float32):
    # shape = (fan_in, fan_out) — same bound as torch's xavier_uniform_.
    fan_in, fan_out = shape
    bound = (6.0 / (fan_in + fan_out)) ** 0.5
    return jax.random.uniform(key, shape, dtype, minval=-bound, maxval=bound)


def reference_forward(x, wq, wk, wv, wo, bo, *, heads, dim_key, dim_value):
    b, n, dim = x.shape
    scale = dim_key ** (-0.5)
    q = (x @ wq).reshape(b, n, heads, dim_key).transpose(0, 2, 1, 3) * scale
    k = (x @ wk).reshape(b, n, heads, dim_key).transpose(0, 2, 1, 3)
    v = (x @ wv).reshape(b, n, heads, dim_value).transpose(0, 2, 1, 3)
    logits = jnp.einsum('bhid,bhjd->bhij', q, k)
    attn = jax.nn.softmax(logits, axis=-1)
    out = jnp.einsum('bhij,bhjd->bhid', attn, v)
    out = out.transpose(0, 2, 1, 3).reshape(b, n, heads * dim_value)
    return out @ wo + bo, attn


if __name__ == "__main__":
    # small shapes consistent with the module
    batch, seq, dim = 2, 8, 32
    heads, dim_key, dim_value = 4, 16, 16

    key = jax.random.PRNGKey(0)
    kx, kq, kk, kv, ko = jax.random.split(key, 5)

    x = jax.random.normal(kx, (batch, seq, dim), jnp.float32)
    wq = xavier_uniform(kq, (dim, dim_key * heads))
    wk = xavier_uniform(kk, (dim, dim_key * heads))
    wv = xavier_uniform(kv, (dim, dim_value * heads))
    wo = xavier_uniform(ko, (dim_value * heads, dim))
    bo = jnp.zeros((dim,), jnp.float32)

    out, attn = attention_forward(
        x, wq, wk, wv, wo, bo,
        heads=heads, dim_key=dim_key, dim_value=dim_value)
    jax.block_until_ready(out)
    jax.block_until_ready(attn)

    out_ref, attn_ref = reference_forward(
        x, wq, wk, wv, wo, bo,
        heads=heads, dim_key=dim_key, dim_value=dim_value)
    assert jnp.allclose(out, out_ref, atol=1e-4, rtol=1e-4)
    assert jnp.allclose(attn, attn_ref, atol=1e-5, rtol=1e-5)

    print("KERNEL_OK")
</pallas_src>

<mosaic_0001>
module attributes {stable_mosaic.version = 11 : i64} {
  func.func @_attn_core_kernel(%arg0: i32, %arg1: i32, %arg2: i32, %arg3: memref<1x1x128x16xf32, #tpu.memory_space<vmem>>, %arg4: memref<1x1x16x128xf32, #tpu.memory_space<vmem>>, %arg5: memref<1x1x128x16xf32, #tpu.memory_space<vmem>>, %arg6: memref<1x1x128x128xf32, #tpu.memory_space<vmem>>, %arg7: memref<1x1x128x16xf32, #tpu.memory_space<vmem>>) attributes {dimension_semantics = [#tpu.dimension_semantics<parallel>, #tpu.dimension_semantics<parallel>, #tpu.dimension_semantics<parallel>], iteration_bounds = array<i64: 2, 4, 1>, scalar_prefetch = 0 : i64, scratch_operands = 0 : i64, tpu.core_type = #tpu.core_type<tc>, window_params = [{transform_indices = @transform_0, window_bounds = array<i64: 1, 1, 128, 16>}, {transform_indices = @transform_1, window_bounds = array<i64: 1, 1, 16, 128>}, {transform_indices = @transform_2, window_bounds = array<i64: 1, 1, 128, 16>}, {transform_indices = @transform_3, window_bounds = array<i64: 1, 1, 128, 128>}, {transform_indices = @transform_4, window_bounds = array<i64: 1, 1, 128, 16>}]} {
    %c0 = arith.constant 0 : index
    %c0_0 = arith.constant 0 : index
    %c0_1 = arith.constant 0 : index
    %c0_2 = arith.constant 0 : index
    %0 = vector.load %arg3[%c0, %c0_0, %c0_1, %c0_2] : memref<1x1x128x16xf32, #tpu.memory_space<vmem>>, vector<1x1x128x16xf32>
    %1 = vector.shape_cast %0 : vector<1x1x128x16xf32> to vector<128x16xf32>
    %c0_3 = arith.constant 0 : index
    %c0_4 = arith.constant 0 : index
    %c0_5 = arith.constant 0 : index
    %c0_6 = arith.constant 0 : index
    %2 = vector.load %arg4[%c0_3, %c0_4, %c0_5, %c0_6] : memref<1x1x16x128xf32, #tpu.memory_space<vmem>>, vector<1x1x16x128xf32>
    %3 = vector.shape_cast %2 : vector<1x1x16x128xf32> to vector<16x128xf32>
    %c0_7 = arith.constant 0 : index
    %c0_8 = arith.constant 0 : index
    %c0_9 = arith.constant 0 : index
    %c0_10 = arith.constant 0 : index
    %4 = vector.load %arg5[%c0_7, %c0_8, %c0_9, %c0_10] : memref<1x1x128x16xf32, #tpu.memory_space<vmem>>, vector<1x1x128x16xf32>
    %5 = vector.shape_cast %4 : vector<1x1x128x16xf32> to vector<128x16xf32>
    %cst = arith.constant dense<0.000000e+00> : vector<128x128xf32>
    %6 = tpu.matmul %1, %3, %cst {dimension_numbers = #tpu.dot_dimension_numbers<[1], [0], [0], [1], [0, 0, 1, 1], [], []>} : vector<128x16xf32>, vector<16x128xf32>, vector<128x128xf32> -> vector<128x128xf32>
    %7 = tpu.iota {dimensions = array<i32: 1>} : vector<128x128xi32>
    %c8_i32 = arith.constant 8 : i32
    %8 = vector.broadcast %c8_i32 : i32 to vector<128x128xi32>
    %9 = arith.cmpi slt, %7, %8 : vector<128x128xi32>
    %cst_11 = arith.constant -1.000000e+30 : f32
    %10 = vector.broadcast %cst_11 : f32 to vector<128x128xf32>
    %11 = arith.select %9, %6, %10 : vector<128x128xi1>, vector<128x128xf32>
    %cst_12 = arith.constant dense<0xFF800000> : vector<128xf32>
    %12 = vector.multi_reduction <maximumf>, %11, %cst_12 [1] : vector<128x128xf32> to vector<128xf32>
    %13 = vector.shape_cast %12 : vector<128xf32> to vector<128x1xf32>
    %14 = vector.broadcast %13 : vector<128x1xf32> to vector<128x128xf32>
    %15 = arith.subf %11, %14 : vector<128x128xf32>
    %16 = math.exp %15 : vector<128x128xf32>
    %cst_13 = arith.constant dense<0.000000e+00> : vector<128xf32>
    %17 = vector.multi_reduction <add>, %16, %cst_13 [1] : vector<128x128xf32> to vector<128xf32>
    %18 = vector.shape_cast %17 : vector<128xf32> to vector<128x1xf32>
    %19 = tpu.reciprocal %18 : vector<128x1xf32> -> vector<128x1xf32>
    %20 = vector.broadcast %19 : vector<128x1xf32> to vector<128x128xf32>
    %21 = arith.mulf %16, %20 : vector<128x128xf32>
    %c0_14 = arith.constant 0 : index
    %c0_15 = arith.constant 0 : index
    %c0_16 = arith.constant 0 : index
    %c0_17 = arith.constant 0 : index
    %22 = vector.load %arg6[%c0_14, %c0_15, %c0_16, %c0_17] : memref<1x1x128x128xf32, #tpu.memory_space<vmem>>, vector<1x1x128x128xf32>
    %23 = vector.shape_cast %22 : vector<1x1x128x128xf32> to vector<128x128xf32>
    %24 = vector.shape_cast %21 : vector<128x128xf32> to vector<1x1x128x128xf32>
    tpu.vector_store %arg6[%c0_14, %c0_15, %c0_16, %c0_17], %24 {strides = array<i32>} : memref<1x1x128x128xf32, #tpu.memory_space<vmem>>, vector<1x1x128x128xf32>,
    %cst_18 = arith.constant dense<0.000000e+00> : vector<128x16xf32>
    %25 = tpu.matmul %21, %5, %cst_18 {dimension_numbers = #tpu.dot_dimension_numbers<[1], [0], [0], [1], [0, 0, 1, 1], [], []>} : vector<128x128xf32>, vector<128x16xf32>, vector<128x16xf32> -> vector<128x16xf32>
    %c0_19 = arith.constant 0 : index
    %c0_20 = arith.constant 0 : index
    %c0_21 = arith.constant 0 : index
    %c0_22 = arith.constant 0 : index
    %26 = vector.load %arg7[%c0_19, %c0_20, %c0_21, %c0_22] : memref<1x1x128x16xf32, #tpu.memory_space<vmem>>, vector<1x1x128x16xf32>
    %27 = vector.shape_cast %26 : vector<1x1x128x16xf32> to vector<128x16xf32>
    %28 = vector.shape_cast %25 : vector<128x16xf32> to vector<1x1x128x16xf32>
    tpu.vector_store %arg7[%c0_19, %c0_20, %c0_21, %c0_22], %28 {strides = array<i32>} : memref<1x1x128x16xf32, #tpu.memory_space<vmem>>, vector<1x1x128x16xf32>,
    return
  }
  func.func @transform_0(%arg0: i32, %arg1: i32, %arg2: i32) -> (i32, i32, i32, i32) {
    %c0_i32 = arith.constant 0 : i32
    %c0_i32_0 = arith.constant 0 : i32
    return %arg0, %arg1, %arg2, %c0_i32 : i32, i32, i32, i32
  }
  func.func @transform_1(%arg0: i32, %arg1: i32, %arg2: i32) -> (i32, i32, i32, i32) {
    %c0_i32 = arith.constant 0 : i32
    %c0_i32_0 = arith.constant 0 : i32
    %c0_i32_1 = arith.constant 0 : i32
    return %arg0, %arg1, %c0_i32, %c0_i32_0 : i32, i32, i32, i32
  }
  func.func @transform_2(%arg0: i32, %arg1: i32, %arg2: i32) -> (i32, i32, i32, i32) {
    %c0_i32 = arith.constant 0 : i32
    %c0_i32_0 = arith.constant 0 : i32
    %c0_i32_1 = arith.constant 0 : i32
    return %arg0, %arg1, %c0_i32, %c0_i32_0 : i32, i32, i32, i32
  }
  func.func @transform_3(%arg0: i32, %arg1: i32, %arg2: i32) -> (i32, i32, i32, i32) {
    %c0_i32 = arith.constant 0 : i32
    %c0_i32_0 = arith.constant 0 : i32
    return %arg0, %arg1, %arg2, %c0_i32 : i32, i32, i32, i32
  }
  func.func @transform_4(%arg0: i32, %arg1: i32, %arg2: i32) -> (i32, i32, i32, i32) {
    %c0_i32 = arith.constant 0 : i32
    %c0_i32_0 = arith.constant 0 : i32
    return %arg0, %arg1, %arg2, %c0_i32 : i32, i32, i32, i32
  }
}

</mosaic_0001>

<bundles_post_ra>
// kernel: tpu_custom_call.1
= control target key start
LH: loop header
LB: loop body
LE: loop exit
PB: predicated region body
PF: predicated region fallthrough
CT: control target
= control target key end

     0   :  { %10 = vsyncpa [#allocation3], 0  ;;  %s2203_s0 = inlined_call_operand.vmem [shape: f32[2,4,128,16], index: 0, kind: input, shape index: {}]   ;;  %s2204_s1 = inlined_call_operand.vmem [shape: f32[2,4,16,128], index: 1, kind: input, shape index: {}]   ;;  %s2205_s2 = inlined_call_operand.vmem [shape: f32[2,4,128,16], index: 2, kind: input, shape index: {}]   ;;  %s2206_s3 = inlined_call_operand.hbm [shape: f32[2,4,128,128], index: 3, kind: output, shape index: {0}]   ;;  %s2207_s4 = inlined_call_operand.vmem [shape: f32[2,4,128,16], index: 4, kind: output, shape index: {1}]  }
   0x1   :  { %12 = vsyncpa [#allocation3 + $0x1], 0  ;;  %s1523_s15 = smov 0   ;;  %s1525_s16 = smov 0  }
   0x2   :  { %s1527_s17 = smov 0   ;;  %s1529_s18 = smov 0  }
   0x3   :  { %s1531_s19 = smov 0   ;;  %s1533_s20 = smov 0  }
   0x4   :  { %s1535_s21 = smov 0   ;;  %s1537_s22 = smov 0  }
   0x5 LB: > { %s1189_s23 = sadd.s32 4294967295, %s1494_s22   ;;  %s1190_s24 = sadd.s32 4294967294, %s1494_s22   ;;  %s1494_s22 = sphi %s1537_s22, %s18_s22   ;;  %s1490_s21 = sphi %s1535_s21, %s2258_s21   ;;  %s1486_s20 = sphi %s1533_s20, %s2257_s20   ;;  %s1482_s19 = sphi %s1531_s19, %s2256_s19   ;;  %s1478_s18 = sphi %s1529_s18, %s2255_s18   ;;  %s1474_s17 = sphi %s1527_s17, %s2254_s17   ;;  %s1470_s16 = sphi %s1525_s16, %s2253_s16   ;;  %s1466_s15 = sphi %s1523_s15, %s2252_s15  }
   0x6   : > { %s33_s25 = sadd.s32 1, %s1486_s20  ;;  %s37_s26 = sadd.s32 1, %s1490_s21 }
   0x7   : > { %p35_p0 = scmp.ge.s32.totalorder %s33_s25, 4  ;;  %p144_p1 = scmp.ne.s32.totalorder %s1474_s17, %s1470_s16 }
   0x8   : > { %p145_p2 = scmp.eq.s32.totalorder %s1189_s23, 7  ;;  %p150_p5 = scmp.ne.s32.totalorder %s1470_s16, %s1466_s15 }
   0x9   : > { %s2260_s25 = smov (%p35_p0, %s33_s25), 0  ;;  %s2262_s26 = smov (!%p35_p0, %s37_s26), %s1490_s21 }
   0xa   : > { %2210 = sst [smem:[#allocation5_spill]] %s2260_s25  ;;  %s128_s27 = ssub.s32 %s1486_s20, %s2260_s25 }
   0xb   : > { %p1574_p3 = por %p145_p2, %p144_p1  ;;  %p39_p4 = scmp.ge.s32.totalorder %s2262_s26, 2 }
   0xc   : > { %p151_p6 = scmp.eq.s32.totalorder %s1190_s24, 7  ;;  %p1193_p7 = scmp.ge.s32.totalorder %s1494_s22, 1 }
   0xd   : > { %s2264_s26 = smov (%p39_p4, %s2262_s26), 0  ;;  %p240_p9 = scmp.lt.s32.totalorder %s1494_s22, 9 }
   0xe   : > { %2212 = sst [smem:[#allocation6_spill]] %s2264_s26  ;;  %p1583_p8 = por %p151_p6, %p150_p5 }
   0xf   : > { %s127_s30 = ssub.s32 %s1490_s21, %s2264_s26  ;;  %s134_s5 = sadd.s32 1, %s1474_s17 }
  0x10   : > { %s129_s6 = sor.u32 %s128_s27, %s127_s30  ;;  %p241_p10 = pnand %p1193_p7, %p240_p9 }
  0x11   : > { %p132_p11 = scmp.eq.s32.totalorder %s129_s6, 0  ;;  %p306_p12 = scmp.lt.s32.totalorder (!%p241_p10), %s1482_s19, 1 }
  0x12   : > { %244 = sbr.rel (%p241_p10) target bundleno = 666 (0x29a), region = 32  ;;  %p308_p13 = scmp.lt.s32.totalorder (!%p241_p10), %s1478_s18, 3 }
  0x13   : > { %s1592_s7 = scalar_select %p132_p11, %s1474_s17, %s134_s5  }
  0x17   : > { %s307_s8 = scalar_select %p306_p12, %s1482_s19, 1  ;;  %vm386_vm0 = vcmask 130048   ;;  %v500_v25 = vlaneseq }
  0x18   : > { %s309_s9 = scalar_select %p308_p13, %s1478_s18, 3 }
  0x19   : > { %s1196_s10 = sshll.u32 %s307_s8, 6  ;;  %s1199_s11 = sshll.u32 %s307_s8, 3  ;;  %v501_v27 = vand.u32 127, %v500_v25 }
  0x1a   : > { %s1195_s12 = sshll.u32 %s309_s9, 4  ;;  %s1198_s13 = sshll.u32 %s309_s9, 1 }
  0x1b   : > { %s315_s14 = sadd.s32 %s1196_s10, %s1195_s12  ;;  %s325_s23 = sadd.s32 %s1199_s11, %s1198_s13  ;;  %vm502_vm1 = vcmp.lt.s32.totalorder %v501_v27, 8 }
  0x1c   : > { %s1598_s24 = sshll.u32 %s315_s14, 3  ;;  %s1200_s27 = sshll.u32 %s325_s23, 3 }
  0x1d   : > { %s1604_s6 = scalar_lea.vmem %s2203_s0, %s1598_s24  ;;  %s327_s8 = scalar_lea.vmem %s2204_s1, %s1200_s27 }
  0x1e   : > { %v369_v0 = vld [vmem:[%s327_s8 + $0x8] sm:$0xff]  ;;  %v368_v1 = vld [vmem:[%s327_s8] sm:$0xff]  ;;  %v354_v4 = vld [vmem:[%s1604_s6 + $0x10] sm:$0xff]  ;;  %s1694_s9 = scalar_lea.vmem %s2205_s2, %s1598_s24  ;;  %s287_s10 = sand.u32 1, %s1470_s16  }
  0x1f   : > { %449 = vmatpush.msra.mxu0 %v369_v0  ;;  %v352_v2 = vld [vmem:[%s1604_s6] sm:$0xff]  ;;  %1229 = vmatpush.msra.mxu3 %v369_v0  ;;  %v353_v3 = vld [vmem:[%s1604_s6 + $0x8] sm:$0xff]  ;;  %v355_v5 = vld [vmem:[%s1604_s6 + $0x18] sm:$0xff]  ;;  %s1194_s11 = sshll.u32 %s287_s10, 7  ;;  %s1224_s13 = sshll.u32 %s1478_s18, 4 }
  0x20   : > { %v362_v6 = vld [vmem:[%s1604_s6 + $0x50] sm:$0xff]  ;;  %v356_v7 = vld [vmem:[%s1604_s6 + $0x20] sm:$0xff]  ;;  %v363_v8 = vld [vmem:[%s1604_s6 + $0x58] sm:$0xff]  ;;  %s1769_s12 = scalar_lea.vmem [#allocation2], %s1194_s11  ;;  %s1225_s14 = sshll.u32 %s1482_s19, 6 }
  0x21   : > { %450 = vmatpush.msra.mxu0 %v368_v1  ;;  %1230 = vmatpush.msra.mxu3 %v368_v1  ;;  %v357_v9 = vld [vmem:[%s1604_s6 + $0x28] sm:$0xff]  ;;  %v364_v10 = vld [vmem:[%s1604_s6 + $0x60] sm:$0xff]  ;;  %v358_v11 = vld [vmem:[%s1604_s6 + $0x30] sm:$0xff]  ;;  %s995_s23 = sadd.s32 %s1225_s14, %s1224_s13  ;;  %s998_s27 = sshll.u32 %s1769_s12, 4  ;;  %s999_s27 = int_to_ptr.vmem [resolvable:$true] %s998_s27 }
  0x22   : > { %1207 = vmatmul.msk.f32.vlgmr.msra.gmra.mxu0 %vm386_vm0, %v352_v2  ;;  %1217 = vmatmul.msk.f32.vlgmr.msra.gmra.mxu3 %vm386_vm0, %v362_v6  ;;  %v365_v12 = vld [vmem:[%s1604_s6 + $0x68] sm:$0xff]  ;;  %v359_v13 = vld [vmem:[%s1604_s6 + $0x38] sm:$0xff]  ;;  %v366_v14 = vld [vmem:[%s1604_s6 + $0x70] sm:$0xff]  ;;  %s1226_s30 = sshll.u32 %s995_s23, 3  ;;  %s969_s26 = scalar_lea.sflag [#allocation3], %s287_s10 }
  0x23   : > { %v360_v15 = vld [vmem:[%s1604_s6 + $0x40] sm:$0xff]  ;;  %v367_v16 = vld [vmem:[%s1604_s6 + $0x78] sm:$0xff]  ;;  %v361_v17 = vld [vmem:[%s1604_s6 + $0x48] sm:$0xff]  ;;  %s997_s8 = scalar_lea.hbm %s2206_s3, %s1226_s30 }
  0x24   : > { %s1000_s25 = sshll.u32 %s997_s8, 4  ;;  %s1001_s25 = int_to_ptr.hbm [resolvable:$true] %s1000_s25 }
  0x2a   : > { %1208 = vmatmul.msk.f32.gmra.mxu0 %vm386_vm0, %v353_v3  ;;  %1218 = vmatmul.msk.f32.gmra.mxu3 %vm386_vm0, %v363_v8 }
  0x32   : > { %1209 = vmatmul.msk.f32.gmra.mxu0 %vm386_vm0, %v354_v4  ;;  %1219 = vmatmul.msk.f32.gmra.mxu3 %vm386_vm0, %v364_v10 }
  0x3a   : > { %1210 = vmatmul.msk.f32.gmra.mxu0 %vm386_vm0, %v355_v5  ;;  %1220 = vmatmul.msk.f32.gmra.mxu3 %vm386_vm0, %v365_v12 }
  0x42   : > { %1211 = vmatmul.msk.f32.gmra.mxu0 %vm386_vm0, %v356_v7  ;;  %1221 = vmatmul.msk.f32.gmra.mxu3 %vm386_vm0, %v366_v14 }
  0x4a   : > { %1212 = vmatmul.msk.f32.gmra.mxu0 %vm386_vm0, %v357_v9  ;;  %1222 = vmatmul.msk.f32.gmra.mxu3 %vm386_vm0, %v367_v16 }
  0x52   : > { %1213 = vmatmul.msk.f32.gmra.mxu0 %vm386_vm0, %v358_v11 }
  0x5a   : > { %1214 = vmatmul.msk.f32.gmra.mxu0 %vm386_vm0, %v359_v13 }
  0x62   : > { %1215 = vmatmul.msk.f32.gmra.mxu0 %vm386_vm0, %v360_v15 }
  0x6a   : > { %1216 = vmatmul.msk.f32.gmra.mxu0 %vm386_vm0, %v361_v17 }
  0x9f   : > { %v452_v18 = vpop.f32.mrf.mxu0 }
  0xa0   : > { %v503_v32 = vsel %vm502_vm1, %v452_v18, -1e+30 }
  0xa5   : > { %v482_v26 = vpop.f32.mrf.mxu3 }
  0xa6   : > { %v513_v36 = vsel %vm502_vm1, %v482_v26, -1e+30 }
  0xa7   : > { %v455_v19 = vpop.f32.mrf.mxu0 }
  0xa8   : > { %v504_v37 = vsel %vm502_vm1, %v455_v19, -1e+30  ;;  %v385_v19 = vld [vmem:[%s1694_s9 + $0x78] sm:$0xff] }
  0xa9   : > { %1231 = vmatpush.msra.mxu2 %v385_v19  ;;  %887 = vmatpush.msra.mxu1 %v385_v19 }
  0xaa   : > { %1232 = vmatpush.msrb.mxu3 %v385_v19 }
  0xad   : > { %v485_v30 = vpop.f32.mrf.mxu3 }
  0xae   : > { %v1662_v45 = vsel %vm502_vm1, %v485_v30, -1e+30 }
  0xaf   : > { %v458_v20 = vpop.f32.mrf.mxu0 }
  0xb0   : > { %v505_v42 = vsel %vm502_vm1, %v458_v20, -1e+30  ;;  %v384_v20 = vld [vmem:[%s1694_s9 + $0x70] sm:$0xff] }
  0xb1   : > { %1233 = vmatpush.msra.mxu2 %v384_v20  ;;  %888 = vmatpush.msra.mxu1 %v384_v20 }
  0xb2   : > { %1234 = vmatpush.msrb.mxu3 %v384_v20 }
  0xb5   : > { %v488_v34 = vpop.f32.mrf.mxu3 }
  0xb6   : > { %v1657_v44 = vsel %vm502_vm1, %v488_v34, -1e+30  ;;  %v381_v34 = vld [vmem:[%s1694_s9 + $0x58] sm:$0xff] }
  0xb7   : > { %v461_v21 = vpop.f32.mrf.mxu0 }
  0xb8   : > { %v506_v40 = vsel %vm502_vm1, %v461_v21, -1e+30 }
  0xbd   : > { %v491_v41 = vpop.f32.mrf.mxu3 }
  0xbe   : > { %v1669_v48 = vsel %vm502_vm1, %v491_v41, -1e+30 }
  0xbf   : > { %v464_v22 = vpop.f32.mrf.mxu0 }
  0xc0   : > { %v1648_v39 = vsel %vm502_vm1, %v464_v22, -1e+30  ;;  %v383_v22 = vld [vmem:[%s1694_s9 + $0x68] sm:$0xff] }
  0xc1   : > { %1235 = vmatpush.msra.mxu2 %v383_v22  ;;  %889 = vmatpush.msra.mxu1 %v383_v22 }
  0xc2   : > { %1236 = vmatpush.msrb.mxu3 %v383_v22 }
  0xc5   : > { %v494_v46 = vpop.f32.mrf.mxu3 }
  0xc6   : > { %v1666_v47 = vsel %vm502_vm1, %v494_v46, -1e+30 }
  0xc7   : > { %v467_v23 = vpop.f32.mrf.mxu0 }
  0xc8   : > { %v1654_v43 = vsel %vm502_vm1, %v467_v23, -1e+30 }
  0xcd   : > { %v497_v49 = vpop.f32.mrf.mxu3 }
  0xce   : > { %v1674_v50 = vsel %vm502_vm1, %v497_v49, -1e+30 }
  0xcf   : > { %v470_v24 = vpop.f32.mrf.mxu0 }
  0xd0   : > { %v1677_v51 = vsel %vm502_vm1, %v470_v24, -1e+30 }
  0xd7   : > { %v473_v28 = vpop.f32.mrf.mxu0 }
  0xd8   : > { %v510_v29 = vsel %vm502_vm1, %v473_v28, -1e+30  ;;  %v382_v28 = vld [vmem:[%s1694_s9 + $0x60] sm:$0xff] }
  0xd9   : > { %533 = vmax.xlane.f32.xlu0 %v510_v29  ;;  %1237 = vmatpush.msra.mxu2 %v382_v28 }
  0xda   : > { %890 = vmatpush.msra.mxu1 %v382_v28  ;;  %1238 = vmatpush.msrb.mxu3 %v382_v28 }
  0xdb   : > { %1239 = vmatpush.msra.mxu2 %v381_v34 }
  0xdc   : > { %891 = vmatpush.msra.mxu1 %v381_v34  ;;  %1240 = vmatpush.msrb.mxu3 %v381_v34 }
  0xdf   : > { %v476_v31 = vpop.f32.mrf.mxu0 }
  0xe0   : > { %v511_v33 = vsel %vm502_vm1, %v476_v31, -1e+30 }
  0xe1   : > { %519 = vmax.xlane.f32.xlu0 %v503_v32  ;;  %535 = vmax.xlane.f32.xlu1 %v511_v33 }
  0xe7   : > { %v479_v35 = vpop.f32.mrf.mxu0 }
  0xe8   : > { %v512_v38 = vsel %vm502_vm1, %v479_v35, -1e+30 }
  0xe9   : > { %539 = vmax.xlane.f32.xlu0 %v513_v36  ;;  %521 = vmax.xlane.f32.xlu1 %v504_v37 }
  0xea   : > { %537 = vmax.xlane.f32.xlu2 %v512_v38 }
  0xf1   : > { %527 = vmax.xlane.f32.xlu0 %v1648_v39  ;;  %525 = vmax.xlane.f32.xlu1 %v506_v40 }
  0xf2   : > { %523 = vmax.xlane.f32.xlu2 %v505_v42 }
  0xf9   : > { %529 = vmax.xlane.f32.xlu0 %v1654_v43  ;;  %543 = vmax.xlane.f32.xlu1 %v1657_v44 }
  0xfa   : > { %541 = vmax.xlane.f32.xlu2 %v1662_v45 }
 0x101   : > { %545 = vmax.xlane.f32.xlu1 %v1669_v48 }
 0x102   : > { %547 = vmax.xlane.f32.xlu2 %v1666_v47 }
 0x109   : > { %531 = vmax.xlane.f32.xlu1 %v1677_v51 }
 0x10a   : > { %549 = vmax.xlane.f32.xlu2 %v1674_v50 }
 0x14c   : > { %v534_v52 = vpop.xlane.xlu0 %533 }
 0x14d   : > { %v558_v53 = vsub.f32 %v510_v29, %v534_v52 }
 0x14f   : > { %v581_v54 = vmul.f32 1.442695, %v558_v53 }
 0x151   : > { %1336 = vpow2.f32 %v581_v54 }
 0x154   : > { %v520_v55 = vpop.xlane.xlu0 %519  ;;  %v536_v56 = vpop.xlane.xlu1 %535 }
 0x155   : > { %v551_v57 = vsub.f32 %v503_v32, %v520_v55  ;;  %v559_v58 = vsub.f32 %v511_v33, %v536_v56 }
 0x157   : > { %v1681_v59 = vpop.eup %1336  ;;  %v567_v60 = vmul.f32 1.442695, %v551_v57  ;;  %v583_v61 = vmul.f32 1.442695, %v559_v58  ;;  %v379_v58 = vld [vmem:[%s1694_s9 + $0x48] sm:$0xff] }
 0x158   : > { %613 = vadd.xlane.f32.xlu0 %v1681_v59 }
 0x159   : > { %1338 = vpow2.f32 %v567_v60  ;;  %v378_v60 = vld [vmem:[%s1694_s9 + $0x40] sm:$0xff] }
 0x15a   : > { %1340 = vpow2.f32 %v583_v61  ;;  %v377_v61 = vld [vmem:[%s1694_s9 + $0x38] sm:$0xff] }
 0x15c   : > { %v540_v62 = vpop.xlane.xlu0 %539  ;;  %v522_v63 = vpop.xlane.xlu1 %521 }
 0x15d   : > { %v552_v0 = vsub.f32 %v504_v37, %v522_v63  ;;  %v538_v1 = vpop.xlane.xlu2 %537  ;;  %v561_v7 = vsub.f32 %v513_v36, %v540_v62  ;;  %v380_v36 = vld [vmem:[%s1694_s9 + $0x50] sm:$0xff]  ;;  %v375_v63 = vld [vmem:[%s1694_s9 + $0x28] sm:$0xff] }
 0x15e   : > { %v560_v2 = vsub.f32 %v512_v38, %v538_v1  ;;  %1241 = vmatpush.msra.mxu2 %v380_v36  ;;  %892 = vmatpush.msra.mxu1 %v380_v36  ;;  %v376_v62 = vld [vmem:[%s1694_s9 + $0x30] sm:$0xff]  ;;  %v373_v1 = vld [vmem:[%s1694_s9 + $0x18] sm:$0xff] }
 0x15f   : > { %v1684_v3 = vpop.eup %1338  ;;  %v569_v4 = vmul.f32 1.442695, %v552_v0  ;;  %v587_v10 = vmul.f32 1.442695, %v561_v7  ;;  %1242 = vmatpush.msrb.mxu3 %v380_v36  ;;  %v374_v0 = vld [vmem:[%s1694_s9 + $0x20] sm:$0xff] }
 0x160   : > { %v1686_v5 = vpop.eup %1340  ;;  %v585_v6 = vmul.f32 1.442695, %v560_v2  ;;  %599 = vadd.xlane.f32.xlu2 %v1684_v3  ;;  %1243 = vmatpush.msra.mxu2 %v379_v58  ;;  %v372_v2 = vld [vmem:[%s1694_s9 + $0x10] sm:$0xff] }
 0x161   : > { %615 = vadd.xlane.f32.xlu0 %v1686_v5  ;;  %1342 = vpow2.f32 %v569_v4  ;;  %893 = vmatpush.msra.mxu1 %v379_v58  ;;  %v371_v4 = vld [vmem:[%s1694_s9 + $0x8] sm:$0xff] }
 0x162   : > { %1344 = vpow2.f32 %v585_v6  ;;  %1244 = vmatpush.msrb.mxu3 %v379_v58  ;;  %1245 = vmatpush.msra.mxu2 %v378_v60  ;;  %v370_v6 = vld [vmem:[%s1694_s9] sm:$0xff]  ;;  %s1414_s9 = sshra.s32 %s1001_s25, 4  ;;  %s1415_s9 = int_to_ptr.hbm [resolvable:$true] %s1414_s9 }
 0x163   : > { %1346 = vpow2.f32 %v587_v10  ;;  %894 = vmatpush.msra.mxu1 %v378_v60  ;;  %s1416_s11 = scalar_lea.hbm %s1415_s9, 128  ;;  %p1421_p4 = scmp.lt.s32.totalorder %s1415_s9, %s2206_s3 }
 0x164   : > { %v528_v8 = vpop.xlane.xlu0 %527  ;;  %v526_v9 = vpop.xlane.xlu1 %525  ;;  %1246 = vmatpush.msrb.mxu3 %v378_v60  ;;  %1247 = vmatpush.msra.mxu2 %v377_v61  ;;  %p1417_p0 = scmp.ne.s32.totalorder %s1415_s9, %s1416_s11 }
 0x165   : > { %v554_v11 = vsub.f32 %v506_v40, %v526_v9  ;;  %v524_v12 = vpop.xlane.xlu2 %523  ;;  %v555_v18 = vsub.f32 %v1648_v39, %v528_v8  ;;  %895 = vmatpush.msra.mxu1 %v377_v61 }
 0x166   : > { %v553_v13 = vsub.f32 %v505_v42, %v524_v12  ;;  %1248 = vmatpush.msrb.mxu3 %v377_v61  ;;  %1249 = vmatpush.msra.mxu2 %v376_v62  ;;  %p1418_p1 = pnand %p1417_p0, %p1574_p3 }
 0x167   : > { %v573_v14 = vmul.f32 1.442695, %v554_v11  ;;  %v1696_v15 = vpop.eup %1342  ;;  %v575_v23 = vmul.f32 1.442695, %v555_v18  ;;  %896 = vmatpush.msra.mxu1 %v376_v62 }
 0x168   : > { %v571_v16 = vmul.f32 1.442695, %v553_v13  ;;  %v1698_v17 = vpop.eup %1344  ;;  %601 = vadd.xlane.f32.xlu1 %v1696_v15  ;;  %1250 = vmatpush.msrb.mxu3 %v376_v62  ;;  %p1419_p2 = pneg %p1418_p1 }
 0x169   : > { %1348 = vpow2.f32 %v573_v14  ;;  %617 = vadd.xlane.f32.xlu2 %v1698_v17  ;;  %v1709_v29 = vpop.eup %1346  ;;  %1251 = vmatpush.msra.mxu2 %v375_v63 }
 0x16a   : > { %1350 = vpow2.f32 %v571_v16  ;;  %897 = vmatpush.msra.mxu1 %v375_v63  ;;  %1252 = vmatpush.msrb.mxu3 %v375_v63 }
 0x16b   : > { %1352 = vpow2.f32 %v575_v23  ;;  %1253 = vmatpush.msra.mxu2 %v374_v0 }
 0x16c   : > { %v544_v21 = vpop.xlane.xlu1 %543  ;;  %v530_v24 = vpop.xlane.xlu0 %529  ;;  %898 = vmatpush.msra.mxu1 %v374_v0  ;;  %1254 = vmatpush.msrb.mxu3 %v374_v0 }
 0x16d   : > { %v563_v25 = vsub.f32 %v1657_v44, %v544_v21  ;;  %v542_v26 = vpop.xlane.xlu2 %541  ;;  %v556_v32 = vsub.f32 %v1654_v43, %v530_v24  ;;  %1255 = vmatpush.msra.mxu2 %v373_v1 }
 0x16e   : > { %v562_v27 = vsub.f32 %v1662_v45, %v542_v26  ;;  %899 = vmatpush.msra.mxu1 %v373_v1  ;;  %1256 = vmatpush.msrb.mxu3 %v373_v1 }
 0x16f   : > { %v591_v30 = vmul.f32 1.442695, %v563_v25  ;;  %v1711_v31 = vpop.eup %1348  ;;  %v577_v37 = vmul.f32 1.442695, %v556_v32  ;;  %1257 = vmatpush.msra.mxu2 %v372_v2 }
 0x170   : > { %v589_v33 = vmul.f32 1.442695, %v562_v27  ;;  %v1715_v35 = vpop.eup %1350  ;;  %619 = vadd.xlane.f32.xlu1 %v1709_v29  ;;  %900 = vmatpush.msra.mxu1 %v372_v2 }
 0x171   : > { %1354 = vpow2.f32 %v591_v30  ;;  %605 = vadd.xlane.f32.xlu2 %v1711_v31  ;;  %603 = vadd.xlane.f32.xlu0 %v1715_v35  ;;  %v1723_v42 = vpop.eup %1352 }
 0x172   : > { %1356 = vpow2.f32 %v589_v33  ;;  %1258 = vmatpush.msrb.mxu3 %v372_v2  ;;  %1259 = vmatpush.msra.mxu2 %v371_v4 }
 0x173   : > { %1358 = vpow2.f32 %v577_v37  ;;  %901 = vmatpush.msra.mxu1 %v371_v4 }
 0x174   : > { %v546_v38 = vpop.xlane.xlu1 %545  ;;  %1260 = vmatpush.msrb.mxu3 %v371_v4  ;;  %1261 = vmatpush.msra.mxu2 %v370_v6 }
 0x175   : > { %v564_v39 = vsub.f32 %v1669_v48, %v546_v38  ;;  %v548_v40 = vpop.xlane.xlu2 %547  ;;  %902 = vmatpush.msra.mxu1 %v370_v6 }
 0x176   : > { %v565_v41 = vsub.f32 %v1666_v47, %v548_v40  ;;  %1262 = vmatpush.msrb.mxu3 %v370_v6 }
 0x177   : > { %v593_v43 = vmul.f32 1.442695, %v564_v39  ;;  %v1725_v44 = vpop.eup %1354 }
 0x178   : > { %v595_v45 = vmul.f32 1.442695, %v565_v41  ;;  %v1727_v46 = vpop.eup %1356  ;;  %607 = vadd.xlane.f32.xlu1 %v1723_v42 }
 0x179   : > { %1360 = vpow2.f32 %v593_v43  ;;  %623 = vadd.xlane.f32.xlu2 %v1725_v44  ;;  %621 = vadd.xlane.f32.xlu0 %v1727_v46  ;;  %v1733_v52 = vpop.eup %1358 }
 0x17a   : > { %1362 = vpow2.f32 %v595_v45 }
 0x17c   : > { %v532_v47 = vpop.xlane.xlu1 %531 }
 0x17d   : > { %v557_v48 = vsub.f32 %v1677_v51, %v532_v47  ;;  %v550_v49 = vpop.xlane.xlu2 %549 }
 0x17e   : > { %v566_v53 = vsub.f32 %v1674_v50, %v550_v49 }
 0x17f   : > { %v1736_v54 = vpop.eup %1360  ;;  %v579_v55 = vmul.f32 1.442695, %v557_v48 }
 0x180   : > { %v1738_v56 = vpop.eup %1362  ;;  %v597_v57 = vmul.f32 1.442695, %v566_v53  ;;  %609 = vadd.xlane.f32.xlu1 %v1733_v52 }
 0x181   : > { %1364 = vpow2.f32 %v579_v55  ;;  %625 = vadd.xlane.f32.xlu2 %v1736_v54  ;;  %627 = vadd.xlane.f32.xlu0 %v1738_v56 }
 0x182   : > { %1366 = vpow2.f32 %v597_v57 }
 0x187   : > { %v1743_v51 = vpop.eup %1364 }
 0x188   : > { %v1745_v50 = vpop.eup %1366  ;;  %611 = vadd.xlane.f32.xlu1 %v1743_v51 }
 0x189   : > { %629 = vadd.xlane.f32.xlu0 %v1745_v50 }
 0x1cb   : > { %v614_v7 = vpop.xlane.xlu0 %613 }
 0x1cc   : > { %1368 = vrcp.f32 %v614_v7  ;;  %v740_v13 = vand.u32 2147483648, %v614_v7  ;;  %v738_v16 = vand.u32 2147483647, %v614_v7  ;;  %vm734_vm3 = vweird.f32 %v614_v7 }
 0x1ce   : > { %v741_v20 = vor.u32 1.1754944e-38, %v740_v13  ;;  %vm739_vm5 = vcmp.eq.f32.partialorder %v738_v16, 8.507059e+37 }
 0x1d2   : > { %v1369_v8 = vpop.eup %1368 }
 0x1d3   : > { %v730_v9 = vmul.f32 %v1369_v8, %v614_v7  ;;  %v600_v10 = vpop.xlane.xlu2 %599  ;;  %vm735_vm2 = vweird.f32 %v1369_v8 }
 0x1d4   : > { %v616_v11 = vpop.xlane.xlu0 %615  ;;  %1370 = vrcp.f32 %v600_v10  ;;  %vm736_vm4 = vmor %vm734_vm3, %vm735_vm2  ;;  %v640_v32 = vand.u32 2147483647, %v600_v10  ;;  %v642_v34 = vand.u32 2147483648, %v600_v10  ;;  %vm636_vm8 = vweird.f32 %v600_v10 }
 0x1d5   : > { %v731_v12 = vsub.f32 1.0, %v730_v9  ;;  %1372 = vrcp.f32 %v616_v11  ;;  %v752_v36 = vand.u32 2147483647, %v616_v11  ;;  %v754_v38 = vand.u32 2147483648, %v616_v11 }
 0x1d6   : > { %vm748_vm9 = vweird.f32 %v616_v11  ;;  %vm641_vm11 = vcmp.eq.f32.partialorder %v640_v32, 8.507059e+37 }
 0x1d7   : > { %v732_v14 = vmul.f32 %v1369_v8, %v731_v12  ;;  %vm1772_vm12 = vcmp.eq.f32.partialorder %v752_v36, 8.507059e+37  ;;  %v755_v49 = vor.u32 1.1754944e-38, %v754_v38 }
 0x1d9   : > { %v733_v18 = vadd.f32 %v1369_v8, %v732_v14 }
 0x1da   : > { %v1371_v19 = vpop.eup %1370 }
 0x1db   : > { %v1373_v21 = vpop.eup %1372  ;;  %v632_v22 = vmul.f32 %v1371_v19, %v600_v10  ;;  %v737_v23 = vsel %vm736_vm4, %v1369_v8, %v733_v18  ;;  %v1762_v25 = vpop.xlane.xlu1 %601  ;;  %vm637_vm6 = vweird.f32 %v1371_v19 }
 0x1dc   : > { %v744_v24 = vmul.f32 %v1373_v21, %v616_v11  ;;  %v742_v26 = vsel %vm739_vm5, %v741_v20, %v737_v23  ;;  %1374 = vrcp.f32 %v1762_v25  ;;  %v1765_v28 = vpop.xlane.xlu2 %617  ;;  %vm749_vm7 = vweird.f32 %v1373_v21  ;;  %vm638_vm10 = vmor %vm636_vm8, %vm637_vm6 }
 0x1dd   : > { %v633_v27 = vsub.f32 1.0, %v632_v22  ;;  %v862_v30 = vmul.f32 %v1681_v59, %v742_v26  ;;  %1376 = vrcp.f32 %v1765_v28  ;;  %v643_v59 = vor.u32 1.1754944e-38, %v642_v34  ;;  %vm1776_vm13 = vmor %vm748_vm9, %vm749_vm7 }
 0x1de   : > { %v745_v33 = vsub.f32 1.0, %v744_v24  ;;  %v654_v53 = vand.u32 2147483647, %v1762_v25  ;;  %v656_v55 = vand.u32 2147483648, %v1762_v25  ;;  %v766_v63 = vand.u32 2147483647, %v1765_v28 }
 0x1df   : > { %v634_v37 = vmul.f32 %v1371_v19, %v633_v27  ;;  %878 = vst [vmem:[%s1769_s12 + $0x38] sm:$0xff] %v862_v30  ;;  %924 = vmatmul.f32.vlgmr.msra.gmra.mxu2 %v862_v30  ;;  %v768_v9 = vand.u32 2147483648, %v1765_v28  ;;  %vm650_vm14 = vweird.f32 %v1762_v25  ;;  %vm762_vm1 = vweird.f32 %v1765_v28 }
 0x1e0   : > { %v746_v39 = vmul.f32 %v1373_v21, %v745_v33  ;;  %vm1809_vm2 = vcmp.eq.f32.partialorder %v654_v53, 8.507059e+37  ;;  %vm1814_vm4 = vcmp.eq.f32.partialorder %v766_v63, 8.507059e+37 }
 0x1e1   : > { %v635_v40 = vadd.f32 %v1371_v19, %v634_v37  ;;  %v769_v16 = vor.u32 1.1754944e-38, %v768_v9 }
 0x1e2   : > { %v747_v41 = vadd.f32 %v1373_v21, %v746_v39  ;;  %v1375_v45 = vpop.eup %1374 }
 0x1e3   : > { %v639_v47 = vsel %vm638_vm10, %v1371_v19, %v635_v40  ;;  %v1782_v57 = vpop.eup %1376  ;;  %v646_v58 = vmul.f32 %v1375_v45, %v1762_v25  ;;  %v1785_v60 = vpop.xlane.xlu1 %619  ;;  %vm651_vm15 = vweird.f32 %v1375_v45 }
 0x1e4   : > { %v644_v61 = vsel %vm641_vm11, %v643_v59, %v639_v47  ;;  %v751_v62 = vsel %vm1776_vm13, %v1373_v21, %v747_v41  ;;  %v758_v0 = vmul.f32 %v1782_v57, %v1765_v28  ;;  %1378 = vrcp.f32 %v1785_v60  ;;  %v1793_v1 = vpop.xlane.xlu0 %603  ;;  %v1795_v2 = vpop.xlane.xlu2 %605  ;;  %vm1821_vm5 = vmor %vm650_vm14, %vm651_vm15 }
 0x1e5   : > { %v855_v4 = vmul.f32 %v1684_v3, %v644_v61  ;;  %v756_v6 = vsel %vm1772_vm12, %v755_v49, %v751_v62  ;;  %v647_v7 = vsub.f32 1.0, %v646_v58  ;;  %1380 = vrcp.f32 %v1793_v1 }
 0x1e6   : > { %v863_v8 = vmul.f32 %v1686_v5, %v756_v6  ;;  %v759_v10 = vsub.f32 1.0, %v758_v0  ;;  %1382 = vrcp.f32 %v1795_v2  ;;  %v657_v5 = vor.u32 1.1754944e-38, %v656_v55 }
 0x1e7   : > { %871 = vst [vmem:[%s1769_s12] sm:$0xff] %v855_v4  ;;  %903 = vmatmul.f32.vlgmr.msra.gmra.mxu1 %v855_v4  ;;  %v648_v11 = vmul.f32 %v1375_v45, %v647_v7  ;;  %vm763_vm3 = vweird.f32 %v1782_v57  ;;  %v668_v18 = vand.u32 2147483647, %v1793_v1  ;;  %vm664_vm6 = vweird.f32 %v1793_v1 }
 0x1e8   : > { %879 = vst [vmem:[%s1769_s12 + $0x40] sm:$0xff] %v863_v8  ;;  %927 = vmatmul.f32.gmra.mxu2 %v863_v8  ;;  %v760_v3 = vmul.f32 %v1782_v57, %v759_v10  ;;  %v670_v22 = vand.u32 2147483648, %v1793_v1  ;;  %vm776_vm7 = vweird.f32 %v1785_v60  ;;  %v780_v23 = vand.u32 2147483647, %v1785_v60  ;;  %vm1842_vm8 = vmor %vm762_vm1, %vm763_vm3 }
 0x1e9   : > { %v649_v13 = vadd.f32 %v1375_v45, %v648_v11  ;;  %v782_v32 = vand.u32 2147483648, %v1785_v60  ;;  %v682_v33 = vand.u32 2147483647, %v1795_v2  ;;  %vm1869_vm9 = vcmp.eq.f32.partialorder %v668_v18, 8.507059e+37 }
 0x1ea   : > { %v1819_v19 = vpop.eup %1378  ;;  %v761_v21 = vadd.f32 %v1782_v57, %v760_v3  ;;  %v684_v48 = vand.u32 2147483648, %v1795_v2  ;;  %vm678_vm12 = vweird.f32 %v1795_v2  ;;  %vm1884_vm13 = vcmp.eq.f32.partialorder %v780_v23, 8.507059e+37 }
 0x1eb   : > { %v1830_v24 = vpop.eup %1380  ;;  %v772_v25 = vmul.f32 %v1819_v19, %v1785_v60  ;;  %v1834_v26 = vpop.xlane.xlu1 %607  ;;  %v653_v27 = vsel %vm1821_vm5, %v1375_v45, %v649_v13  ;;  %vm777_vm10 = vweird.f32 %v1819_v19  ;;  %vm1898_vm1 = vcmp.eq.f32.partialorder %v682_v33, 8.507059e+37 }
 0x1ec   : > { %v1848_v34 = vpop.eup %1382  ;;  %v660_v36 = vmul.f32 %v1830_v24, %v1793_v1  ;;  %1384 = vrcp.f32 %v1834_v26  ;;  %v1853_v37 = vpop.xlane.xlu0 %621  ;;  %v658_v28 = vsel %vm1809_vm2, %v657_v5, %v653_v27  ;;  %v765_v39 = vsel %vm1842_vm8, %v1782_v57, %v761_v21  ;;  %vm1893_vm14 = vmor %vm776_vm7, %vm777_vm10 }
 0x1ed   : > { %v1855_v38 = vpop.xlane.xlu2 %623  ;;  %v773_v40 = vsub.f32 1.0, %v772_v25  ;;  %v674_v59 = vmul.f32 %v1848_v34, %v1795_v2  ;;  %1386 = vrcp.f32 %v1853_v37  ;;  %v856_v41 = vmul.f32 %v1696_v15, %v658_v28 }
 0x1ee   : > { %v661_v43 = vsub.f32 1.0, %v660_v36  ;;  %1388 = vrcp.f32 %v1855_v38  ;;  %v770_v45 = vsel %vm1814_vm4, %v769_v16, %v765_v39  ;;  %vm665_vm11 = vweird.f32 %v1830_v24 }
 0x1ef   : > { %v774_v49 = vmul.f32 %v1819_v19, %v773_v40  ;;  %v675_v53 = vsub.f32 1.0, %v674_v59  ;;  %872 = vst [vmem:[%s1769_s12 + $0x8] sm:$0xff] %v856_v41  ;;  %906 = vmatmul.f32.gmra.mxu1 %v856_v41  ;;  %v864_v15 = vmul.f32 %v1698_v17, %v770_v45  ;;  %v671_v57 = vor.u32 1.1754944e-38, %v670_v22  ;;  %vm1912_vm2 = vmor %vm664_vm6, %vm665_vm11 }
 0x1f0   : > { %v662_v55 = vmul.f32 %v1830_v24, %v661_v43  ;;  %v783_v17 = vor.u32 1.1754944e-38, %v782_v32  ;;  %vm679_vm15 = vweird.f32 %v1848_v34  ;;  %v685_v7 = vor.u32 1.1754944e-38, %v684_v48 }
 0x1f1   : > { %v676_v58 = vmul.f32 %v1848_v34, %v675_v53  ;;  %880 = vst [vmem:[%s1769_s12 + $0x48] sm:$0xff] %v864_v15  ;;  %930 = vmatmul.f32.gmra.mxu2 %v864_v15  ;;  %v775_v61 = vadd.f32 %v1819_v19, %v774_v49  ;;  %v794_v3 = vand.u32 2147483647, %v1853_v37  ;;  %v796_v12 = vand.u32 2147483648, %v1853_v37  ;;  %vm680_vm6 = vmor %vm678_vm12, %vm679_vm15 }
 0x1f2   : > { %v1888_v63 = vpop.eup %1384  ;;  %v663_v0 = vadd.f32 %v1830_v24, %v662_v55  ;;  %vm790_vm3 = vweird.f32 %v1853_v37  ;;  %vm692_vm4 = vweird.f32 %v1834_v26  ;;  %v696_v32 = vand.u32 2147483647, %v1834_v26 }
 0x1f3   : > { %v1902_v8 = vpop.eup %1386  ;;  %v688_v9 = vmul.f32 %v1888_v63, %v1834_v26  ;;  %v1906_v10 = vpop.xlane.xlu1 %609  ;;  %v779_v11 = vsel %vm1893_vm14, %v1819_v19, %v775_v61  ;;  %v677_v18 = vadd.f32 %v1848_v34, %v676_v58  ;;  %vm1946_vm5 = vcmp.eq.f32.partialorder %v794_v3, 8.507059e+37 }
 0x1f4   : > { %v1921_v5 = vpop.eup %1388  ;;  %v786_v13 = vmul.f32 %v1902_v8, %v1853_v37  ;;  %1390 = vrcp.f32 %v1906_v10  ;;  %v1926_v1 = vpop.xlane.xlu0 %627  ;;  %v667_v16 = vsel %vm1912_vm2, %v1830_v24, %v663_v0  ;;  %v784_v21 = vsel %vm1884_vm13, %v783_v17, %v779_v11 }
 0x1f5   : > { %v1928_v14 = vpop.xlane.xlu2 %625  ;;  %v689_v19 = vsub.f32 1.0, %v688_v9  ;;  %v800_v20 = vmul.f32 %v1921_v5, %v1855_v38  ;;  %1392 = vrcp.f32 %v1926_v1  ;;  %v838_v23 = vand.u32 2147483648, %v1926_v1 }
 0x1f6   : > { %v787_v22 = vsub.f32 1.0, %v786_v13  ;;  %1394 = vrcp.f32 %v1928_v14  ;;  %v672_v27 = vsel %vm1869_vm9, %v671_v57, %v667_v16  ;;  %v824_v36 = vand.u32 2147483648, %v1928_v14 }
 0x1f7   : > { %v690_v24 = vmul.f32 %v1888_v63, %v689_v19  ;;  %v801_v25 = vsub.f32 1.0, %v800_v20  ;;  %v857_v28 = vmul.f32 %v1715_v35, %v672_v27  ;;  %v865_v39 = vmul.f32 %v1709_v29, %v784_v21 }
 0x1f8   : > { %v788_v33 = vmul.f32 %v1902_v8, %v787_v22  ;;  %v681_v59 = vsel %vm680_vm6, %v1848_v34, %v677_v18  ;;  %v797_v41 = vor.u32 1.1754944e-38, %v796_v12  ;;  %v698_v43 = vand.u32 2147483648, %v1834_v26 }
 0x1f9   : > { %v802_v40 = vmul.f32 %v1921_v5, %v801_v25  ;;  %v1964_v47 = vor.u32 1.1754944e-38, %v838_v23  ;;  %873 = vst [vmem:[%s1769_s12 + $0x10] sm:$0xff] %v857_v28  ;;  %909 = vmatmul.f32.gmra.mxu1 %v857_v28  ;;  %933 = vmatmul.f32.gmra.mxu2 %v865_v39  ;;  %v686_v29 = vsel %vm1898_vm1, %v685_v7, %v681_v59  ;;  %vm791_vm7 = vweird.f32 %v1902_v8 }
 0x1fa   : > { %v1962_v45 = vpop.eup %1390  ;;  %v789_v35 = vadd.f32 %v1902_v8, %v788_v33  ;;  %881 = vst [vmem:[%s1769_s12 + $0x50] sm:$0xff] %v865_v39  ;;  %v858_v49 = vmul.f32 %v1711_v31, %v686_v29  ;;  %v691_v53 = vadd.f32 %v1888_v63, %v690_v24  ;;  %vm693_vm8 = vweird.f32 %v1888_v63  ;;  %vm792_vm10 = vmor %vm790_vm3, %vm791_vm7 }
 0x1fb   : > { %v1971_v2 = vpop.eup %1392  ;;  %v702_v34 = vmul.f32 %v1962_v45, %v1906_v10  ;;  %v1976_v48 = vpop.xlane.xlu1 %611  ;;  %v1985_v57 = vor.u32 1.1754944e-38, %v824_v36  ;;  %vm832_vm9 = vweird.f32 %v1926_v1  ;;  %vm2000_vm11 = vcmp.eq.f32.partialorder %v696_v32, 8.507059e+37  ;;  %vm2012_vm13 = vmor %vm692_vm4, %vm693_vm8 }
 0x1fc   : > { %v1981_v15 = vpop.eup %1394  ;;  %v828_v55 = vmul.f32 %v1971_v2, %v1926_v1  ;;  %1396 = vrcp.f32 %v1976_v48  ;;  %v726_v58 = vand.u32 2147483648, %v1976_v48  ;;  %v1989_v61 = vpop.xlane.xlu0 %629  ;;  %874 = vst [vmem:[%s1769_s12 + $0x18] sm:$0xff] %v858_v49  ;;  %v793_v60 = vsel %vm792_vm10, %v1902_v8, %v789_v35 }
 0x1fd   : > { %v703_v62 = vsub.f32 1.0, %v702_v34  ;;  %v814_v31 = vmul.f32 %v1981_v15, %v1928_v14  ;;  %1398 = vrcp.f32 %v1989_v61  ;;  %vm819_vm12 = vweird.f32 %v1981_v15 }
 0x1fe   : > { %v829_v0 = vsub.f32 1.0, %v828_v55  ;;  %v2005_v4 = vor.u32 1.1754944e-38, %v726_v58  ;;  %v852_v6 = vand.u32 2147483648, %v1989_v61  ;;  %v695_v11 = vsel %vm2012_vm13, %v1888_v63, %v691_v53 }
 0x1ff   : > { %v704_v37 = vmul.f32 %v1962_v45, %v703_v62  ;;  %v815_v9 = vsub.f32 1.0, %v814_v31  ;;  %vm818_vm14 = vweird.f32 %v1928_v14  ;;  %v798_v26 = vsel %vm1946_vm5, %v797_v41, %v793_v60 }
 0x200   : > { %v830_v3 = vmul.f32 %v1971_v2, %v829_v0  ;;  %v2023_v12 = vor.u32 1.1754944e-38, %v852_v6  ;;  %v699_v13 = vor.u32 1.1754944e-38, %v698_v43  ;;  %vm720_vm15 = vweird.f32 %v1976_v48 }
 0x201   : > { %v816_v16 = vmul.f32 %v1981_v15, %v815_v9  ;;  %v866_v8 = vmul.f32 %v1727_v46, %v798_v26  ;;  %v803_v18 = vadd.f32 %v1921_v5, %v802_v40  ;;  %vm804_vm1 = vweird.f32 %v1855_v38  ;;  %912 = vmatmul.f32.gmra.mxu1 %v858_v49 }
 0x202   : > { %v2032_v63 = vpop.eup %1396  ;;  %vm846_vm2 = vweird.f32 %v1989_v61  ;;  %v700_v19 = vsel %vm2000_vm11, %v699_v13, %v695_v11  ;;  %vm805_vm3 = vweird.f32 %v1921_v5  ;;  %v808_v20 = vand.u32 2147483647, %v1855_v38 }
 0x203   : > { %v810_v21 = vand.u32 2147483648, %v1855_v38  ;;  %v1399_v46 = vpop.eup %1398  ;;  %v716_v22 = vmul.f32 %v2032_v63, %v1976_v48  ;;  %vm721_vm4 = vweird.f32 %v2032_v63  ;;  %882 = vst [vmem:[%s1769_s12 + $0x58] sm:$0xff] %v866_v8  ;;  %936 = vmatmul.f32.gmra.mxu2 %v866_v8  ;;  %v859_v23 = vmul.f32 %v1723_v42, %v700_v19  ;;  %vm2045_vm5 = vmor %vm804_vm1, %vm805_vm3 }
 0x204   : > { %v831_v25 = vadd.f32 %v1971_v2, %v830_v3  ;;  %v842_v27 = vmul.f32 %v1399_v46, %v1989_v61  ;;  %vm847_vm6 = vweird.f32 %v1399_v46  ;;  %v807_v38 = vsel %vm2045_vm5, %v1921_v5, %v803_v18  ;;  %vm2089_vm5 = vmor %vm720_vm15, %vm721_vm4 }
 0x205   : > { %vm809_vm7 = vcmp.eq.f32.partialorder %v808_v20, 8.507059e+37  ;;  %v717_v30 = vsub.f32 1.0, %v716_v22  ;;  %875 = vst [vmem:[%s1769_s12 + $0x20] sm:$0xff] %v859_v23  ;;  %v811_v32 = vor.u32 1.1754944e-38, %v810_v21  ;;  %vm833_vm8 = vweird.f32 %v1971_v2 }
 0x206   : > { %v836_v42 = vand.u32 2147483647, %v1926_v1  ;;  %v843_v33 = vsub.f32 1.0, %v842_v27  ;;  %vm834_vm10 = vmor %vm832_vm9, %vm833_vm8  ;;  %v705_v36 = vadd.f32 %v1962_v45, %v704_v37  ;;  %vm706_vm11 = vweird.f32 %v1906_v10 }
 0x207   : > { %vm707_vm13 = vweird.f32 %v1962_v45  ;;  %v718_v5 = vmul.f32 %v2032_v63, %v717_v30  ;;  %v812_v28 = vsel %vm809_vm7, %v811_v32, %v807_v38  ;;  %v835_v39 = vsel %vm834_vm10, %v1971_v2, %v831_v25  ;;  %vm2077_vm9 = vmor %vm818_vm14, %vm819_vm12 }
 0x208   : > { %vm837_vm1 = vcmp.eq.f32.partialorder %v836_v42, 8.507059e+37  ;;  %vm2064_vm3 = vmor %vm706_vm11, %vm707_vm13  ;;  %v844_v59 = vmul.f32 %v1399_v46, %v843_v33  ;;  %v867_v1 = vmul.f32 %v1725_v44, %v812_v28  ;;  %v710_v2 = vand.u32 2147483647, %v1906_v10 }
 0x209   : > { %v840_v41 = vsel %vm837_vm1, %v1964_v47, %v835_v39  ;;  %v709_v43 = vsel %vm2064_vm3, %v1962_v45, %v705_v36  ;;  %v712_v44 = vand.u32 2147483648, %v1906_v10  ;;  %v817_v47 = vadd.f32 %v1981_v15, %v816_v16  ;;  %915 = vmatmul.f32.gmra.mxu1 %v859_v23  ;;  %vm848_vm12 = vmor %vm846_vm2, %vm847_vm6 }
 0x20a   : > { %v869_v35 = vmul.f32 %v1738_v56, %v840_v41  ;;  %883 = vst [vmem:[%s1769_s12 + $0x60] sm:$0xff] %v867_v1  ;;  %v822_v34 = vand.u32 2147483647, %v1928_v14  ;;  %v845_v49 = vadd.f32 %v1399_v46, %v844_v59  ;;  %v850_v56 = vand.u32 2147483647, %v1989_v61 }
 0x20b   : > { %v719_v53 = vadd.f32 %v2032_v63, %v718_v5  ;;  %939 = vmatmul.f32.gmra.mxu2 %v867_v1  ;;  %vm711_vm14 = vcmp.eq.f32.partialorder %v710_v2, 8.507059e+37  ;;  %v713_v10 = vor.u32 1.1754944e-38, %v712_v44  ;;  %v821_v55 = vsel %vm2077_vm9, %v1981_v15, %v817_v47 }
 0x20c   : > { %885 = vst [vmem:[%s1769_s12 + $0x70] sm:$0xff] %v869_v35  ;;  %945 = vmatmul.f32.vlgmr.msrb.gmra.mxu3 %v869_v35  ;;  %v724_v14 = vand.u32 2147483647, %v1976_v48  ;;  %vm823_vm15 = vcmp.eq.f32.partialorder %v822_v34, 8.507059e+37  ;;  %v849_v58 = vsel %vm848_vm12, %v1399_v46, %v845_v49  ;;  %vm851_vm4 = vcmp.eq.f32.partialorder %v850_v56, 8.507059e+37 }
 0x20d   : > { %v723_v61 = vsel %vm2089_vm5, %v2032_v63, %v719_v53  ;;  %v714_v62 = vsel %vm711_vm14, %v713_v10, %v709_v43  ;;  %v826_v31 = vsel %vm823_vm15, %v1985_v57, %v821_v55  ;;  %v854_v17 = vsel %vm851_vm4, %v2023_v12, %v849_v58 }
 0x20e   : > { %vm725_vm2 = vcmp.eq.f32.partialorder %v724_v14, 8.507059e+37  ;;  %v860_v15 = vmul.f32 %v1733_v52, %v714_v62  ;;  %v868_v48 = vmul.f32 %v1736_v54, %v826_v31  ;;  %v870_v0 = vmul.f32 %v1745_v50, %v854_v17 }
 0x20f   : > { %v728_v6 = vsel %vm725_vm2, %v2005_v4, %v723_v61 }
 0x210   : > { %v861_v7 = vmul.f32 %v1743_v51, %v728_v6  ;;  %876 = vst [vmem:[%s1769_s12 + $0x28] sm:$0xff] %v860_v15 }
 0x211   : > { %884 = vst [vmem:[%s1769_s12 + $0x68] sm:$0xff] %v868_v48  ;;  %918 = vmatmul.f32.gmra.mxu1 %v860_v15 }
 0x212   : > { %886 = vst [vmem:[%s1769_s12 + $0x78] sm:$0xff] %v870_v0 }
 0x213   : > { %942 = vmatmul.f32.gmra.mxu2 %v868_v48  ;;  %877 = vst [vmem:[%s1769_s12 + $0x30] sm:$0xff] %v861_v7  ;;  %s1420_s12 = scalar_lea.hbm %s2206_s3, 1024 }
 0x214   : > { %948 = vmatmul.f32.gmra.mxu3 %v870_v0  ;;  %p1422_p5 = scmp.lt.s32.totalorder %s1420_s12, %s1416_s11 }
 0x216   : > { %p1423_p6 = por %p1422_p5, %p1421_p4 }
 0x218   : > { %p1424_p7 = pnand %p1423_p6, %p1419_p2 }
 0x219   : > { %921 = vmatmul.f32.gmra.mxu1 %v861_v7 }
 0x21a   : > { %1427 = shalt.err (!%p1424_p7)
}
 0x21b   : > { %s1496_s10 = smov 128   ;;  %s1497_s23 = smov 8  }
 0x21c   : > { %1263 = dma.vmem_to_hbm [thread:$0]  (%p1574_p3), %s999_s27, 2048, %s1001_s25, %s969_s26, %s1496_s10, %s1496_s10, %s1497_s23  }
 0x21d   : > { %s2141_s6 = scalar_lea.vmem %s2207_s4, %s1598_s24 }
 0x262   : > { %v925_v52 = vpop.f32.mrf.mxu2 }
 0x263   : > { %959 = vst.msk [vmem:[%s2141_s6 + $0x38] sm:$0xff] %vm386_vm0, %v925_v52 }
 0x264   : > { %v904_v54 = vpop.f32.mrf.mxu1 }
 0x265   : > { %952 = vst.msk [vmem:[%s2141_s6] sm:$0xff] %vm386_vm0, %v904_v54 }
 0x26b   : > { %v928_v51 = vpop.f32.mrf.mxu2 }
 0x26c   : > { %960 = vst.msk [vmem:[%s2141_s6 + $0x40] sm:$0xff] %vm386_vm0, %v928_v51  ;;  %v907_v50 = vpop.f32.mrf.mxu1 }
 0x26d   : > { %953 = vst.msk [vmem:[%s2141_s6 + $0x8] sm:$0xff] %vm386_vm0, %v907_v50 }
 0x274   : > { %v931_v57 = vpop.f32.mrf.mxu2 }
 0x275   : > { %961 = vst.msk [vmem:[%s2141_s6 + $0x48] sm:$0xff] %vm386_vm0, %v931_v57 }
 0x276   : > { %v910_v4 = vpop.f32.mrf.mxu1 }
 0x277   : > { %954 = vst.msk [vmem:[%s2141_s6 + $0x10] sm:$0xff] %vm386_vm0, %v910_v4 }
 0x27c   : > { %v934_v37 = vpop.f32.mrf.mxu2 }
 0x27d   : > { %962 = vst.msk [vmem:[%s2141_s6 + $0x50] sm:$0xff] %vm386_vm0, %v934_v37 }
 0x27e   : > { %v913_v9 = vpop.f32.mrf.mxu1 }
 0x27f   : > { %955 = vst.msk [vmem:[%s2141_s6 + $0x18] sm:$0xff] %vm386_vm0, %v913_v9 }
 0x286   : > { %v937_v60 = vpop.f32.mrf.mxu2  ;;  %v916_v11 = vpop.f32.mrf.mxu1 }
 0x287   : > { %963 = vst.msk [vmem:[%s2141_s6 + $0x58] sm:$0xff] %vm386_vm0, %v937_v60 }
 0x288   : > { %956 = vst.msk [vmem:[%s2141_s6 + $0x20] sm:$0xff] %vm386_vm0, %v916_v11 }
 0x28e   : > { %v940_v3 = vpop.f32.mrf.mxu2  ;;  %v919_v26 = vpop.f32.mrf.mxu1 }
 0x28f   : > { %v946_v12 = vpop.f32.mrf.mxu3  ;;  %964 = vst.msk [vmem:[%s2141_s6 + $0x60] sm:$0xff] %vm386_vm0, %v940_v3 }
 0x290   : > { %966 = vst.msk [vmem:[%s2141_s6 + $0x70] sm:$0xff] %vm386_vm0, %v946_v12 }
 0x291   : > { %957 = vst.msk [vmem:[%s2141_s6 + $0x28] sm:$0xff] %vm386_vm0, %v919_v26 }
 0x296   : > { %v943_v13 = vpop.f32.mrf.mxu2  ;;  %v922_v8 = vpop.f32.mrf.mxu1 }
 0x297   : > { %v949_v16 = vpop.f32.mrf.mxu3  ;;  %965 = vst.msk [vmem:[%s2141_s6 + $0x68] sm:$0xff] %vm386_vm0, %v943_v13 }
 0x298   : > { %967 = vst.msk [vmem:[%s2141_s6 + $0x78] sm:$0xff] %vm386_vm0, %v949_v16 }
 0x299   : > { %958 = vst.msk [vmem:[%s2141_s6 + $0x30] sm:$0xff] %vm386_vm0, %v922_v8 }
 0x29a PF: > { %p1269_p3 = scmp.ge.s32.totalorder %s1494_s22, 2  ;;  %s1019_s28 = sand.u32 1, %s1466_s15  }
 0x29b   : > { %s1020_s24 = scalar_lea.sflag [#allocation3], %s1019_s28 }
 0x29c   : > { %p1266_p9 = pnand %p1269_p3, %p1583_p8 }
 0x29e   : > { %p1267_p10 = pneg %p1266_p9 }
 0x2a0   : > { %1461 = dma.done.wait (%p1267_p10), %s1020_s24, 2048  }
 0x2a1   : > { %1463 = vsyncadd (%p1267_p10), %s1020_s24, 4294965248  ;;  %s18_s22 = sadd.s32 1, %s1494_s22   ;;  %s2250_s27 = sld [smem:[#allocation5_spill]] }
 0x2a2   : > { %p15_p11 = scmp.ge.s32.totalorder %s18_s22, 10   ;;  %s2251_s8 = sld [smem:[#allocation6_spill]] }
 0x2a3   : > { %s2252_s15 = smov %s1470_s16  ;;  %s2253_s16 = smov %s1474_s17 }
 0x2a4   : > { %s2254_s17 = smov %s1592_s7  ;;  %s2255_s18 = smov %s1486_s20 }
 0x2a5   : > { %s2256_s19 = smov %s1490_s21  ;;  %17 = sbr.rel (!%p15_p11) target bundleno = 5 (0x5), region = 85 }
 0x2a7   : > { %s2257_s20 = smov %s2250_s27 }
 0x2a8   : > { %s2258_s21 = smov %s2251_s8 }
 0x2aa   :  { %1042 = vsyncpa [#allocation3], 1 }
 0x2ab   :  { %1044 = vsyncpa [#allocation3 + $0x1], 1 }

</bundles_post_ra>
